<compile_context>
chip_gen: v7x
topology: tpu7x:2x2x1
jax: 0.10.0
libtpu: 0.0.40
codegen_flags: <defaults>
</compile_context>

<pallas_src>
import functools

import jax
import jax.numpy as jnp
from jax.experimental import pallas as pl
from jax.experimental.pallas import tpu as pltpu


def _flatten_head_kernel(x_ref, w_ref, b_ref, o_ref, *, v_tile):
    # x_ref: (v_tile, B, nf)      input dtype (f32 here); leading-axis index is a free view
    # w_ref: (v_tile, nf, T)      bf16 weights, already transposed to [nf, T]
    # b_ref: (1, v_tile*T)        f32 bias, lane-dense
    # o_ref: (B, v_tile*T)        lane-dense output slab
    ys = []
    for v in range(v_tile):  # static unroll; v_tile is small per grid step
        xv = x_ref[v].astype(w_ref.dtype)                      # [B, nf] -> bf16 MXU input
        ys.append(jnp.dot(xv, w_ref[v],                        # [B, T], f32 accumulate
                          preferred_element_type=jnp.float32))
    y = jnp.concatenate(ys, axis=-1)                           # [B, v_tile*T] in-registers
    o_ref[...] = (y + b_ref[...]).astype(o_ref.dtype)          # one dense add + one store
    # head_dropout = 0 (eval) -> identity; nothing to do.


def flatten_head_individual(x, weights, biases, *, v_tile=None,
                            vmem_limit_bytes=48 * 1024 * 1024):
    """PatchTST Flatten_Head forward, individual=True, head_dropout=0.

    x:       [B, n_vars, patch_len, patch_num]
    weights: [n_vars, nf, target_window]   (transposed torch weights, i.e. W_i.T)
    biases:  [n_vars, target_window]
    returns: [B, n_vars, target_window]
    """
    B, n_vars, patch_len, patch_num = x.shape
    nf = patch_len * patch_num
    tgt = weights.shape[-1]

    if v_tile is None:
        v_tile = n_vars                       # everything fits VMEM at these shapes -> 1 step
    assert n_vars % v_tile == 0
    n_tiles = n_vars // v_tile
    if n_tiles > 1:
        # Output/bias block lane width is v_tile*tgt; keep it lane-dense & unmasked.
        assert (v_tile * tgt) % 128 == 0, "v_tile * target_window must be a multiple of 128 when tiling vars"

    # Free row-major view == torch.flatten(start_dim=-2); then put vars on the leading,
    # untiled axis so the kernel indexes them at zero cost.  x is tiny vs. the weights
    # at small B, so this wrapper-side transpose is negligible.
    x_vbn = jnp.transpose(x.reshape(B, n_vars, nf), (1, 0, 2))     # [n_vars, B, nf]
    # Weight-bandwidth-bound op -> stream weights as bf16.
    # (v5e/v6e: int8 + per-var scales is a further option; v7x: fp8 e4m3.)
    w_bf16 = weights.astype(jnp.bfloat16)                          # [n_vars, nf, tgt]
    # Lane-dense bias row, f32.
    b_flat = biases.astype(jnp.float32).reshape(1, n_vars * tgt)   # [1, n_vars*tgt]

    kernel = functools.partial(_flatten_head_kernel, v_tile=v_tile)
    cost = pl.CostEstimate(
        flops=2 * B * n_vars * nf * tgt,
        transcendentals=0,
        bytes_accessed=(x_vbn.size * x_vbn.dtype.itemsize
                        + w_bf16.size * 2
                        + b_flat.size * 4
                        + B * n_vars * tgt * x.dtype.itemsize),
    )

    out2d = pl.pallas_call(
        kernel,
        out_shape=jax.ShapeDtypeStruct((B, n_vars * tgt), x.dtype),
        grid_spec=pltpu.PrefetchScalarGridSpec(
            num_scalar_prefetch=0,
            grid=(n_tiles,),
            in_specs=[
                pl.BlockSpec((v_tile, B, nf), lambda i: (i, 0, 0)),
                pl.BlockSpec((v_tile, nf, tgt), lambda i: (i, 0, 0)),
                pl.BlockSpec((1, v_tile * tgt), lambda i: (0, i)),
            ],
            out_specs=pl.BlockSpec((B, v_tile * tgt), lambda i: (0, i)),
        ),
        compiler_params=pltpu.CompilerParams(
            # shards var-tiles across v7x's 2 TCs when n_tiles > 1
            dimension_semantics=("parallel",),
            vmem_limit_bytes=vmem_limit_bytes,
        ),
        cost_estimate=cost,
    )(x_vbn, w_bf16, b_flat)

    # Free row-major view back to the torch output layout.
    return out2d.reshape(B, n_vars, tgt)


# TODO(synk): the individual=False branch re-creates an uninitialized nn.Linear on CUDA
# inside forward (get_linear); it has no well-defined weights, so it is not ported.


if __name__ == "__main__":
    # Small shapes consistent with the module: B=2, n_vars=4, patch_len=16, patch_num=8
    # -> nf=128, target_window=32 (so n_vars*T = 128 lanes: one unmasked vreg row).
    B, n_vars, patch_len, patch_num, target_window = 2, 4, 16, 8, 32
    nf = patch_len * patch_num

    key = jax.random.PRNGKey(0)
    kx, kw, kb = jax.random.split(key, 3)

    x = jax.random.normal(kx, (B, n_vars, patch_len, patch_num), dtype=jnp.float32)
    # Per-variable Linear(nf, target_window) params; stored transposed ([nf, T]) so the
    # kernel computes x @ W directly.
    weights = jax.random.normal(kw, (n_vars, nf, target_window), dtype=jnp.float32) * 0.02
    biases = jax.random.normal(kb, (n_vars, target_window), dtype=jnp.float32) * 0.02

    out = flatten_head_individual(x, weights, biases)
    out = jax.block_until_ready(out)
    assert out.shape == (B, n_vars, target_window)

    # Reference with the same bf16 rounding of x / weights (f32 accumulate) -> tight check.
    x_flat = x.reshape(B, n_vars, nf)
    xr = x_flat.astype(jnp.bfloat16).astype(jnp.float32)
    wr = weights.astype(jnp.bfloat16).astype(jnp.float32)
    ref_bf16 = jnp.einsum("bvn,vnt->bvt", xr, wr) + biases[None, :, :]
    assert jnp.allclose(out, ref_bf16, atol=1e-3, rtol=1e-3), \
        float(jnp.max(jnp.abs(out - ref_bf16)))

    # Sanity vs. full-f32 math (bf16 weight streaming introduces ~1e-3 abs error here).
    ref_f32 = jnp.einsum("bvn,vnt->bvt", x_flat, weights) + biases[None, :, :]
    assert jnp.allclose(out, ref_f32, atol=2e-2, rtol=2e-2)

    print("KERNEL_OK")
</pallas_src>

<mosaic_0001>
module attributes {stable_mosaic.version = 11 : i64} {
  func.func @_flatten_head_kernel(%arg0: i32, %arg1: memref<4x2x128xf32, #tpu.memory_space<vmem>>, %arg2: memref<4x128x32xbf16, #tpu.memory_space<vmem>>, %arg3: memref<1x128xf32, #tpu.memory_space<vmem>>, %arg4: memref<2x128xf32, #tpu.memory_space<vmem>>) attributes {dimension_semantics = [#tpu.dimension_semantics<parallel>], iteration_bounds = array<i64: 1>, scalar_prefetch = 0 : i64, scratch_operands = 0 : i64, tpu.core_type = #tpu.core_type<tc>, window_params = [{transform_indices = @transform_0, window_bounds = array<i64: 4, 2, 128>}, {transform_indices = @transform_1, window_bounds = array<i64: 4, 128, 32>}, {transform_indices = @transform_2, window_bounds = array<i64: 1, 128>}, {transform_indices = @transform_3, window_bounds = array<i64: 2, 128>}]} {
    %c0 = arith.constant 0 : index
    %c0_0 = arith.constant 0 : index
    %c0_1 = arith.constant 0 : index
    %0 = vector.load %arg1[%c0, %c0_0, %c0_1] : memref<4x2x128xf32, #tpu.memory_space<vmem>>, vector<1x2x128xf32>
    %1 = vector.shape_cast %0 : vector<1x2x128xf32> to vector<2x128xf32>
    %2 = arith.truncf %1 : vector<2x128xf32> to vector<2x128xbf16>
    %c0_2 = arith.constant 0 : index
    %c0_3 = arith.constant 0 : index
    %c0_4 = arith.constant 0 : index
    %3 = vector.load %arg2[%c0_2, %c0_3, %c0_4] : memref<4x128x32xbf16, #tpu.memory_space<vmem>>, vector<1x128x32xbf16>
    %4 = vector.shape_cast %3 : vector<1x128x32xbf16> to vector<128x32xbf16>
    %cst = arith.constant dense<0.000000e+00> : vector<2x32xf32>
    %5 = tpu.matmul %2, %4, %cst {dimension_numbers = #tpu.dot_dimension_numbers<[1], [0], [0], [1], [0, 0, 1, 1], [], []>} : vector<2x128xbf16>, vector<128x32xbf16>, vector<2x32xf32> -> vector<2x32xf32>
    %c1 = arith.constant 1 : index
    %c0_5 = arith.constant 0 : index
    %c0_6 = arith.constant 0 : index
    %6 = vector.load %arg1[%c1, %c0_5, %c0_6] : memref<4x2x128xf32, #tpu.memory_space<vmem>>, vector<1x2x128xf32>
    %7 = vector.shape_cast %6 : vector<1x2x128xf32> to vector<2x128xf32>
    %8 = arith.truncf %7 : vector<2x128xf32> to vector<2x128xbf16>
    %c1_7 = arith.constant 1 : index
    %c0_8 = arith.constant 0 : index
    %c0_9 = arith.constant 0 : index
    %9 = vector.load %arg2[%c1_7, %c0_8, %c0_9] : memref<4x128x32xbf16, #tpu.memory_space<vmem>>, vector<1x128x32xbf16>
    %10 = vector.shape_cast %9 : vector<1x128x32xbf16> to vector<128x32xbf16>
    %cst_10 = arith.constant dense<0.000000e+00> : vector<2x32xf32>
    %11 = tpu.matmul %8, %10, %cst_10 {dimension_numbers = #tpu.dot_dimension_numbers<[1], [0], [0], [1], [0, 0, 1, 1], [], []>} : vector<2x128xbf16>, vector<128x32xbf16>, vector<2x32xf32> -> vector<2x32xf32>
    %c2 = arith.constant 2 : index
    %c0_11 = arith.constant 0 : index
    %c0_12 = arith.constant 0 : index
    %12 = vector.load %arg1[%c2, %c0_11, %c0_12] : memref<4x2x128xf32, #tpu.memory_space<vmem>>, vector<1x2x128xf32>
    %13 = vector.shape_cast %12 : vector<1x2x128xf32> to vector<2x128xf32>
    %14 = arith.truncf %13 : vector<2x128xf32> to vector<2x128xbf16>
    %c2_13 = arith.constant 2 : index
    %c0_14 = arith.constant 0 : index
    %c0_15 = arith.constant 0 : index
    %15 = vector.load %arg2[%c2_13, %c0_14, %c0_15] : memref<4x128x32xbf16, #tpu.memory_space<vmem>>, vector<1x128x32xbf16>
    %16 = vector.shape_cast %15 : vector<1x128x32xbf16> to vector<128x32xbf16>
    %cst_16 = arith.constant dense<0.000000e+00> : vector<2x32xf32>
    %17 = tpu.matmul %14, %16, %cst_16 {dimension_numbers = #tpu.dot_dimension_numbers<[1], [0], [0], [1], [0, 0, 1, 1], [], []>} : vector<2x128xbf16>, vector<128x32xbf16>, vector<2x32xf32> -> vector<2x32xf32>
    %c3 = arith.constant 3 : index
    %c0_17 = arith.constant 0 : index
    %c0_18 = arith.constant 0 : index
    %18 = vector.load %arg1[%c3, %c0_17, %c0_18] : memref<4x2x128xf32, #tpu.memory_space<vmem>>, vector<1x2x128xf32>
    %19 = vector.shape_cast %18 : vector<1x2x128xf32> to vector<2x128xf32>
    %20 = arith.truncf %19 : vector<2x128xf32> to vector<2x128xbf16>
    %c3_19 = arith.constant 3 : index
    %c0_20 = arith.constant 0 : index
    %c0_21 = arith.constant 0 : index
    %21 = vector.load %arg2[%c3_19, %c0_20, %c0_21] : memref<4x128x32xbf16, #tpu.memory_space<vmem>>, vector<1x128x32xbf16>
    %22 = vector.shape_cast %21 : vector<1x128x32xbf16> to vector<128x32xbf16>
    %cst_22 = arith.constant dense<0.000000e+00> : vector<2x32xf32>
    %23 = tpu.matmul %20, %22, %cst_22 {dimension_numbers = #tpu.dot_dimension_numbers<[1], [0], [0], [1], [0, 0, 1, 1], [], []>} : vector<2x128xbf16>, vector<128x32xbf16>, vector<2x32xf32> -> vector<2x32xf32>
    %24 = tpu.concatenate %5, %11, %17, %23 in 1 : vector<2x32xf32>, vector<2x32xf32>, vector<2x32xf32>, vector<2x32xf32> -> vector<2x128xf32>
    %c0_23 = arith.constant 0 : index
    %c0_24 = arith.constant 0 : index
    %25 = vector.load %arg3[%c0_23, %c0_24] : memref<1x128xf32, #tpu.memory_space<vmem>>, vector<1x128xf32>
    %26 = vector.broadcast %25 : vector<1x128xf32> to vector<2x128xf32>
    %27 = arith.addf %24, %26 : vector<2x128xf32>
    %c0_25 = arith.constant 0 : index
    %c0_26 = arith.constant 0 : index
    %28 = vector.load %arg4[%c0_25, %c0_26] : memref<2x128xf32, #tpu.memory_space<vmem>>, vector<2x128xf32>
    tpu.vector_store %arg4[%c0_25, %c0_26], %27 {strides = array<i32>} : memref<2x128xf32, #tpu.memory_space<vmem>>, vector<2x128xf32>,
    return
  }
  func.func @transform_0(%arg0: i32) -> (i32, i32, i32) {
    %c0_i32 = arith.constant 0 : i32
    %c0_i32_0 = arith.constant 0 : i32
    %c0_i32_1 = arith.constant 0 : i32
    return %arg0, %c0_i32, %c0_i32_0 : i32, i32, i32
  }
  func.func @transform_1(%arg0: i32) -> (i32, i32, i32) {
    %c0_i32 = arith.constant 0 : i32
    %c0_i32_0 = arith.constant 0 : i32
    %c0_i32_1 = arith.constant 0 : i32
    return %arg0, %c0_i32, %c0_i32_0 : i32, i32, i32
  }
  func.func @transform_2(%arg0: i32) -> (i32, i32) {
    %c0_i32 = arith.constant 0 : i32
    %c0_i32_0 = arith.constant 0 : i32
    return %c0_i32, %arg0 : i32, i32
  }
  func.func @transform_3(%arg0: i32) -> (i32, i32) {
    %c0_i32 = arith.constant 0 : i32
    %c0_i32_0 = arith.constant 0 : i32
    return %c0_i32, %arg0 : i32, i32
  }
}

</mosaic_0001>

<bundles_post_ra>
// kernel: tpu_custom_call.1
= control target key start
LH: loop header
LB: loop body
LE: loop exit
PB: predicated region body
PF: predicated region fallthrough
CT: control target
= control target key end

     0   :  { %v749_v1 = vmov 0.0   ;;  %vm750_vm0 = vmmov 0   ;;  %s938_s0 = inlined_call_operand.vmem [shape: f32[4,2,128], index: 0, kind: input, shape index: {}]   ;;  %s939_s1 = inlined_call_operand.vmem [shape: bf16[4,128,32], index: 1, kind: input, shape index: {}]   ;;  %s940_s2 = inlined_call_operand.vmem [shape: f32[1,128], index: 2, kind: input, shape index: {}]   ;;  %s941_s3 = inlined_call_operand.hbm [shape: f32[2,128], index: 3, kind: output, shape index: {}]  }
   0x1   :  { %v693_v0 = vld [vmem:[%s939_s1] sm:$0xff]   ;;  %607 = vmatprep.subr.bf16.mxu0 %v749_v1  ;;  %627 = vmatprep.subr.bf16.mxu1 %v749_v1  ;;  %v695_v3 = vld [vmem:[%s939_s1 + $0x8] sm:$0xff]   ;;  %v697_v5 = vld [vmem:[%s939_s1 + $0x10] sm:$0xff]  }
   0x2   :  { %v694_v2 = vld [vmem:[%s939_s1 + $0x40] sm:$0xff]   ;;  %608 = vmatpush3.bf16.msra.mxu0 %v693_v0  ;;  %623 = vmatprep.mubr.msk.bf16.mxu0 %vm750_vm0, %v749_v1  ;;  %v696_v4 = vld [vmem:[%s939_s1 + $0x48] sm:$0xff]   ;;  %v698_v6 = vld [vmem:[%s939_s1 + $0x50] sm:$0xff]  }
   0x3   :  { %628 = vmatpush3.bf16.msra.mxu1 %v694_v2  ;;  %609 = vmatprep.subr.bf16.mxu0 %v749_v1  ;;  %v699_v7 = vld [vmem:[%s939_s1 + $0x18] sm:$0xff]   ;;  %v701_v9 = vld [vmem:[%s939_s1 + $0x20] sm:$0xff]   ;;  %v703_v11 = vld [vmem:[%s939_s1 + $0x28] sm:$0xff]  }
   0x4   :  { %629 = vmatprep.subr.bf16.mxu1 %v749_v1  ;;  %643 = vmatprep.mubr.msk.bf16.mxu1 %vm750_vm0, %v749_v1  ;;  %v700_v8 = vld [vmem:[%s939_s1 + $0x58] sm:$0xff]   ;;  %v702_v10 = vld [vmem:[%s939_s1 + $0x60] sm:$0xff]   ;;  %v704_v12 = vld [vmem:[%s939_s1 + $0x68] sm:$0xff]  }
   0x5   :  { %v705_v13 = vld [vmem:[%s939_s1 + $0x30] sm:$0xff]   ;;  %v707_v15 = vld [vmem:[%s939_s1 + $0x38] sm:$0xff]   ;;  %v16_v17 = vld [vmem:[%s938_s0] sm:$0x3] }
   0x6   :  { %610 = vmatpush3.bf16.msra.mxu0 %v695_v3  ;;  %v706_v14 = vld [vmem:[%s939_s1 + $0x70] sm:$0xff]   ;;  %v708_v16 = vld [vmem:[%s939_s1 + $0x78] sm:$0xff]   ;;  %v495_v18 = vld [vmem:[%s938_s0 + $0x2] sm:$0x3]  ;;  %v17_v19 = vpack.c.bf16 %v16_v17, %v16_v17 }
   0x7   :  { %630 = vmatpush3.bf16.msra.mxu1 %v696_v4  ;;  %611 = vmatprep.subr.bf16.mxu0 %v749_v1  ;;  %v124_v20 = vpack.c.bf16 %v495_v18, %v495_v18  ;;  %v709_v21 = vld [vmem:[%s939_s1 + $0x80] sm:$0xff]  }
   0x8   :  { %631 = vmatprep.subr.bf16.mxu1 %v749_v1  ;;  %v710_v22 = vld [vmem:[%s939_s1 + $0xc0] sm:$0xff]  }
   0xa   :  { %612 = vmatpush3.bf16.msra.mxu0 %v697_v5 }
   0xb   :  { %632 = vmatpush3.bf16.msra.mxu1 %v698_v6  ;;  %613 = vmatprep.subr.bf16.mxu0 %v749_v1 }
   0xc   :  { %633 = vmatprep.subr.bf16.mxu1 %v749_v1 }
   0xe   :  { %614 = vmatpush3.bf16.msra.mxu0 %v699_v7 }
   0xf   :  { %634 = vmatpush3.bf16.msra.mxu1 %v700_v8  ;;  %615 = vmatprep.subr.bf16.mxu0 %v749_v1 }
  0x10   :  { %635 = vmatprep.subr.bf16.mxu1 %v749_v1 }
  0x12   :  { %616 = vmatpush3.bf16.msra.mxu0 %v701_v9 }
  0x13   :  { %636 = vmatpush3.bf16.msra.mxu1 %v702_v10  ;;  %617 = vmatprep.subr.bf16.mxu0 %v749_v1 }
  0x14   :  { %637 = vmatprep.subr.bf16.mxu1 %v749_v1 }
  0x16   :  { %618 = vmatpush3.bf16.msra.mxu0 %v703_v11 }
  0x17   :  { %638 = vmatpush3.bf16.msra.mxu1 %v704_v12  ;;  %619 = vmatprep.subr.bf16.mxu0 %v749_v1 }
  0x18   :  { %639 = vmatprep.subr.bf16.mxu1 %v749_v1 }
  0x1a   :  { %620 = vmatpush3.bf16.msra.mxu0 %v705_v13 }
  0x1b   :  { %640 = vmatpush3.bf16.msra.mxu1 %v706_v14  ;;  %621 = vmatprep.subr.bf16.mxu0 %v749_v1 }
  0x1c   :  { %641 = vmatprep.subr.bf16.mxu1 %v749_v1 }
  0x1e   :  { %622 = vmatpush3.bf16.msra.mxu0 %v707_v15 }
  0x1f   :  { %642 = vmatpush3.bf16.msra.mxu1 %v708_v16  ;;  %647 = vmatprep.subr.bf16.mxu0 %v749_v1 }
  0x20   :  { %667 = vmatprep.subr.bf16.mxu1 %v749_v1 }
  0x21   :  { %624 = vmatmul.mubr.bf16.vlgmr.msra.gmra.mrb[0].mxu0 %v17_v19 }
  0x22   :  { %8 = vsyncpa [#allocation3], 0  ;;  %644 = vmatmul.mubr.bf16.vlgmr.msra.gmra.mrb[0].mxu1 %v124_v20  ;;  %648 = vmatpush3.bf16.msra.mxu0 %v709_v21  ;;  %v711_v23 = vld [vmem:[%s939_s1 + $0x88] sm:$0xff]   ;;  %v713_v25 = vld [vmem:[%s939_s1 + $0x90] sm:$0xff]   ;;  %s751_s30 = smov 32   ;;  %vm458_vm1 = vcmask 261120  }
  0x23   :  { %668 = vmatpush3.bf16.msra.mxu1 %v710_v22  ;;  %649 = vmatprep.subr.bf16.mxu0 %v749_v1  ;;  %v712_v24 = vld [vmem:[%s939_s1 + $0xc8] sm:$0xff]   ;;  %v714_v26 = vld [vmem:[%s939_s1 + $0xd0] sm:$0xff]   ;;  %v715_v27 = vld [vmem:[%s939_s1 + $0x98] sm:$0xff]   ;;  %vm460_vm2 = vcmask 523264   ;;  %vm462_vm3 = vcmask 785408   ;;  %s754_s6 = smov [#allocation2]  }
  0x24   :  { %669 = vmatprep.subr.bf16.mxu1 %v749_v1  ;;  %663 = vmatprep.mubr.msk.bf16.mxu0 %vm750_vm0, %v749_v1  ;;  %v716_v28 = vld [vmem:[%s939_s1 + $0xd8] sm:$0xff]   ;;  %v717_v29 = vld [vmem:[%s939_s1 + $0xa0] sm:$0xff]   ;;  %v719_v31 = vld [vmem:[%s939_s1 + $0xa8] sm:$0xff]   ;;  %s479_s7 = sshll.u32 %s754_s6, 4  ;;  %s480_s7 = int_to_ptr.vmem [resolvable:$true] %s479_s7 }
  0x25   :  { %683 = vmatprep.mubr.msk.bf16.mxu1 %vm750_vm0, %v749_v1  ;;  %v718_v30 = vld [vmem:[%s939_s1 + $0xe0] sm:$0xff]   ;;  %v720_v32 = vld [vmem:[%s939_s1 + $0xe8] sm:$0xff]   ;;  %v721_v33 = vld [vmem:[%s939_s1 + $0xb0] sm:$0xff]   ;;  %s725_s8 = scalar_lea.vmem %s480_s7, 32  ;;  %p730_p1 = scmp.lt.s32.totalorder %s480_s7, %s480_s7 }
  0x26   :  { %650 = vmatpush3.bf16.msra.mxu0 %v711_v23  ;;  %v722_v34 = vld [vmem:[%s939_s1 + $0xf0] sm:$0xff]   ;;  %v723_v35 = vld [vmem:[%s939_s1 + $0xb8] sm:$0xff]   ;;  %v520_v36 = vld [vmem:[%s938_s0 + $0x4] sm:$0x3]  ;;  %p726_p0 = scmp.ne.s32.totalorder %s480_s7, %s725_s8  ;;  %p731_p2 = scmp.lt.s32.totalorder %s725_s8, %s725_s8 }
  0x27   :  { %670 = vmatpush3.bf16.msra.mxu1 %v712_v24  ;;  %651 = vmatprep.subr.bf16.mxu0 %v749_v1  ;;  %v724_v37 = vld [vmem:[%s939_s1 + $0xf8] sm:$0xff]   ;;  %v545_v38 = vld [vmem:[%s938_s0 + $0x6] sm:$0x3]  ;;  %v232_v39 = vpack.c.bf16 %v520_v36, %v520_v36  ;;  %s752_s0 = smov 64   ;;  %s753_s1 = smov 96  }
  0x28   :  { %671 = vmatprep.subr.bf16.mxu1 %v749_v1  ;;  %v340_v40 = vpack.c.bf16 %v545_v38, %v545_v38  ;;  %v570_v60 = vld [vmem:[%s940_s2] ss:$0 sm:$0xff]  ;;  %p732_p3 = por %p731_p2, %p730_p1 }
  0x2a   :  { %652 = vmatpush3.bf16.msra.mxu0 %v713_v25  ;;  %p733_p4 = pnand %p732_p3, %p726_p0 }
  0x2b   :  { %672 = vmatpush3.bf16.msra.mxu1 %v714_v26  ;;  %653 = vmatprep.subr.bf16.mxu0 %v749_v1 }
  0x2c   :  { %673 = vmatprep.subr.bf16.mxu1 %v749_v1 }
  0x2e   :  { %654 = vmatpush3.bf16.msra.mxu0 %v715_v27 }
  0x2f   :  { %674 = vmatpush3.bf16.msra.mxu1 %v716_v28  ;;  %655 = vmatprep.subr.bf16.mxu0 %v749_v1 }
  0x30   :  { %675 = vmatprep.subr.bf16.mxu1 %v749_v1 }
  0x32   :  { %656 = vmatpush3.bf16.msra.mxu0 %v717_v29 }
  0x33   :  { %676 = vmatpush3.bf16.msra.mxu1 %v718_v30  ;;  %657 = vmatprep.subr.bf16.mxu0 %v749_v1 }
  0x34   :  { %677 = vmatprep.subr.bf16.mxu1 %v749_v1 }
  0x36   :  { %658 = vmatpush3.bf16.msra.mxu0 %v719_v31 }
  0x37   :  { %678 = vmatpush3.bf16.msra.mxu1 %v720_v32  ;;  %659 = vmatprep.subr.bf16.mxu0 %v749_v1 }
  0x38   :  { %679 = vmatprep.subr.bf16.mxu1 %v749_v1 }
  0x3a   :  { %660 = vmatpush3.bf16.msra.mxu0 %v721_v33 }
  0x3b   :  { %680 = vmatpush3.bf16.msra.mxu1 %v722_v34  ;;  %661 = vmatprep.subr.bf16.mxu0 %v749_v1 }
  0x3c   :  { %681 = vmatprep.subr.bf16.mxu1 %v749_v1 }
  0x3e   :  { %662 = vmatpush3.bf16.msra.mxu0 %v723_v35 }
  0x3f   :  { %682 = vmatpush3.bf16.msra.mxu1 %v724_v37 }
  0x41   :  { %664 = vmatmul.mubr.bf16.vlgmr.msra.gmra.mrb[4].mxu0 %v232_v39 }
  0x42   :  { %684 = vmatmul.mubr.bf16.vlgmr.msra.gmra.mrb[4].mxu1 %v340_v40 }
  0xf4   :  { %v116_v41 = vpop.f32.mrb[0].mxu0 }
  0xf5   :  { %v224_v42 = vpop.f32.mrb[0].mxu1  ;;  %v625_v43 = vpop.f32.mrb[1].mxu0 }
  0xf6   :  { %447 = vrot.lane.b32.xlu0 %v224_v42, %s751_s30  ;;  %v645_v44 = vpop.f32.mrb[1].mxu1  ;;  %v119_v45 = vpop.f32.mrb[2].mxu0 }
  0xf7   :  { %v227_v46 = vpop.f32.mrb[2].mxu1  ;;  %v626_v47 = vpop.f32.mrb[3].mxu0 }
  0xf8   :  { %v646_v48 = vpop.f32.mrb[3].mxu1 }
 0x114   :  { %v332_v49 = vpop.f32.mrb[4].mxu0 }
 0x115   :  { %v440_v50 = vpop.f32.mrb[4].mxu1  ;;  %451 = vrot.lane.b32.xlu0 %v332_v49, %s752_s0  ;;  %v665_v51 = vpop.f32.mrb[5].mxu0 }
 0x116   :  { %v685_v52 = vpop.f32.mrb[5].mxu1  ;;  %455 = vrot.lane.b32.xlu1 %v440_v50, %s753_s1  ;;  %v335_v53 = vpop.f32.mrb[6].mxu0 }
 0x117   :  { %v443_v54 = vpop.f32.mrb[6].mxu1  ;;  %v666_v55 = vpop.f32.mrb[7].mxu0 }
 0x118   :  { %v686_v56 = vpop.f32.mrb[7].mxu1 }
 0x168   :  { %v448_v57 = vpop.permute.xlu0 %447 }
 0x169   :  { %v459_v58 = vsel %vm458_vm1, %v116_v41, %v448_v57 }
 0x187   :  { %v452_v59 = vpop.permute.xlu0 %451 }
 0x188   :  { %v461_v61 = vsel %vm460_vm2, %v459_v58, %v452_v59  ;;  %v456_v62 = vpop.permute.xlu1 %455 }
 0x189   :  { %v463_v63 = vsel %vm462_vm3, %v461_v61, %v456_v62 }
 0x18a   :  { %v471_v0 = vadd.f32 %v570_v60, %v463_v63 }
 0x18c   :  { %472 = vst [vmem:[#allocation2] sm:$0x3] %v471_v0 }
 0x18d   :  { %736 = shalt.err (!%p733_p4)
}
 0x18e   :  { %s737_s11 = scalar_lea.hbm %s941_s3, 32 }
 0x18f   :  { %p738_p5 = scmp.ne.s32.totalorder %s941_s3, %s737_s11  ;;  %p741_p6 = scmp.lt.u32.totalorder %s737_s11, %s941_s3 }
 0x191   :  { %p743_p7 = pnand %p741_p6, %p738_p5 }
 0x193   :  { %746 = shalt.err (!%p743_p7)
}
 0x194   :  { %482 = dma.vmem_to_hbm [thread:$0]  %s480_s7, 32, %s941_s3, [#allocation3]  }
 0x195   :  { %747 = dma.done.wait [#allocation3], 32  }
 0x196   :  { %748 = vsyncadd [#allocation3], 4294967264 }
 0x197   :  { %486 = vsyncpa [#allocation3], 1 }

</bundles_post_ra>
